<compile_context>
chip_gen: v6e
topology: v6e:2x2x1
jax: 0.10.0
libtpu: 0.0.40
codegen_flags: <defaults>
</compile_context>

<pallas_src>
import functools

import jax
import jax.numpy as jnp
from jax.experimental import pallas as pl
from jax.experimental.pallas import tpu as pltpu

INPUT_SIZE = 768
H1, H2, H3, OUT = 256, 128, 64, 8
NEG_SLOPE = 0.01           # PyTorch F.leaky_relu default
BN_EPS = 1e-5

# Packed-bias lane offsets. Every segment starts on a 128-lane boundary so all
# in-kernel slices are lane-aligned (no cross-lane shuffles).
B1_OFF, B2_OFF, B3_OFF, BH_OFF = 0, 256, 384, 512
BIAS_WIDTH = 640


def _leaky_relu(x):
    # mul + max (2 VPU ops) instead of cmp + mul + select.
    return jnp.maximum(x, NEG_SLOPE * x)


def model_kernel(x_ref, w1_ref, w2_ref, w3_ref, wres_ref, w4_ref, bias_ref, o_ref):
    """One batch tile of the full forward pass.

    BN (eval) + linear bias are pre-folded into the bf16 weights / packed f32
    bias. x arrives as f32 and is cast to bf16 on the VPU (hides under MXU).
    """
    x = x_ref[...].astype(jnp.bfloat16)                        # [TB, 768] bf16

    # Residual head first: starts streaming the MXU as soon as the tile lands.
    res = jnp.dot(x, wres_ref[...], preferred_element_type=jnp.float32)

    # Block 1: fc1 (+ folded bn1) -> leaky_relu   (elementwise kept in f32)
    h = jnp.dot(x, w1_ref[...], preferred_element_type=jnp.float32)
    h = _leaky_relu(h + bias_ref[:, B1_OFF:B1_OFF + H1])
    # TODO(synk): dropout1/2/3 are identity here (eval-mode semantics).

    # Block 2: fc2 (+ folded bn2) -> leaky_relu
    h = jnp.dot(h.astype(jnp.bfloat16), w2_ref[...],
                preferred_element_type=jnp.float32)
    h = _leaky_relu(h + bias_ref[:, B2_OFF:B2_OFF + H2])

    # Block 3: fc3 (+ folded bn3) -> leaky_relu
    h = jnp.dot(h.astype(jnp.bfloat16), w3_ref[...],
                preferred_element_type=jnp.float32)
    h = _leaky_relu(h + bias_ref[:, B3_OFF:B3_OFF + H3])

    # Head: fc4(h3) + residual + (b4 + b_res)
    out = res + jnp.dot(h.astype(jnp.bfloat16), w4_ref[...],
                        preferred_element_type=jnp.float32)
    o_ref[...] = (out + bias_ref[:, BH_OFF:BH_OFF + OUT]).astype(o_ref.dtype)


def prepare_kernel_params(params):
    """One-time constant folding / packing / casting (NOT per forward call)."""
    def fold(w, b, g, beta, m, v):
        s = g / jnp.sqrt(v + BN_EPS)            # bn(y) = y*s + t
        t = beta - m * s
        return w * s[None, :], b * s + t        # W' = W*s (col-wise), b' = b*s + t

    w1, b1 = fold(params["w1"], params["b1"],
                  params["bn1_g"], params["bn1_b"], params["bn1_m"], params["bn1_v"])
    w2, b2 = fold(params["w2"], params["b2"],
                  params["bn2_g"], params["bn2_b"], params["bn2_m"], params["bn2_v"])
    w3, b3 = fold(params["w3"], params["b3"],
                  params["bn3_g"], params["bn3_b"], params["bn3_m"], params["bn3_v"])

    # fc4 and residual_fc biases share the output lanes -> pack their sum once.
    b_head = params["b4"] + params["bres"]

    # Pack all biases into one lane-aligned [1, 640] f32 array.
    bias = jnp.zeros((1, BIAS_WIDTH), jnp.float32)
    bias = bias.at[0, B1_OFF:B1_OFF + H1].set(b1)
    bias = bias.at[0, B2_OFF:B2_OFF + H2].set(b2)
    bias = bias.at[0, B3_OFF:B3_OFF + H3].set(b3)
    bias = bias.at[0, BH_OFF:BH_OFF + OUT].set(b_head)

    return dict(
        w1=w1.astype(jnp.bfloat16),
        w2=w2.astype(jnp.bfloat16),
        w3=w3.astype(jnp.bfloat16),
        wres=params["wres"].astype(jnp.bfloat16),
        w4=params["w4"].astype(jnp.bfloat16),
        bias=bias,
    )


def _pick_batch_tile(B, block_b):
    """Batch tile: multiple of 8 (or full B), >= 2 grid steps whenever B > 8."""
    if B <= 8:
        return B                                   # full-dim tile, grid=(1,)
    if B <= 2 * block_b:
        # Split the batch ~in half (rounded up to 8 sublanes) so the parallel
        # grid axis has >= 2 steps and both v7x TensorCores get work.
        return min(8 * pl.cdiv(pl.cdiv(B, 2), 8), block_b)
    return block_b


@functools.partial(jax.jit, static_argnames=("block_b",))
def enhanced_eight_class_forward(x, kparams, *, block_b=512):
    """x: [B, 768] float32. kparams: output of prepare_kernel_params."""
    B = x.shape[0]
    assert block_b % 8 == 0, "batch tile must be a multiple of 8 sublanes"
    tb = _pick_batch_tile(B, block_b)
    grid = (pl.cdiv(B, tb),)             # trailing partial block handled by Pallas

    # Constant index_map: weights/bias stay VMEM-resident across grid steps
    # (Pallas skips re-DMA when the block index does not change).
    const = lambda i: (0, 0)

    return pl.pallas_call(
        model_kernel,
        out_shape=jax.ShapeDtypeStruct((B, OUT), jnp.float32),
        grid_spec=pltpu.PrefetchScalarGridSpec(
            num_scalar_prefetch=0,
            grid=grid,
            in_specs=[
                pl.BlockSpec((tb, INPUT_SIZE), lambda i: (i, 0)),      # x tile (f32)
                pl.BlockSpec((INPUT_SIZE, H1), const),                 # w1'
                pl.BlockSpec((H1, H2), const),                         # w2'
                pl.BlockSpec((H2, H3), const),                         # w3'
                pl.BlockSpec((INPUT_SIZE, OUT), const),                # wres
                pl.BlockSpec((H3, OUT), const),                        # w4
                pl.BlockSpec((1, BIAS_WIDTH), const),                  # packed biases
            ],
            out_specs=pl.BlockSpec((tb, OUT), lambda i: (i, 0)),
        ),
        compiler_params=pltpu.CompilerParams(
            dimension_semantics=("parallel",),   # shard batch across v7x's 2 TCs
        ),
    )(x, kparams["w1"], kparams["w2"], kparams["w3"],
      kparams["wres"], kparams["w4"], kparams["bias"])


def init_params(key):
    """PyTorch-like Linear init + non-trivial BatchNorm running stats."""
    ks = jax.random.split(key, 22)

    def linear(kw, kb, fan_in, fan_out):
        bound = 1.0 / jnp.sqrt(fan_in)
        w = jax.random.uniform(kw, (fan_in, fan_out), jnp.float32, -bound, bound)
        b = jax.random.uniform(kb, (fan_out,), jnp.float32, -bound, bound)
        return w, b

    w1, b1 = linear(ks[0], ks[1], INPUT_SIZE, H1)
    w2, b2 = linear(ks[2], ks[3], H1, H2)
    w3, b3 = linear(ks[4], ks[5], H2, H3)
    w4, b4 = linear(ks[6], ks[7], H3, OUT)
    wres, bres = linear(ks[8], ks[9], INPUT_SIZE, OUT)

    def bn(kg, kb_, km, kv, n):
        g = jax.random.uniform(kg, (n,), jnp.float32, 0.5, 1.5)
        b = 0.1 * jax.random.normal(kb_, (n,), jnp.float32)
        m = 0.1 * jax.random.normal(km, (n,), jnp.float32)
        v = jax.random.uniform(kv, (n,), jnp.float32, 0.5, 1.5)
        return g, b, m, v

    bn1_g, bn1_b, bn1_m, bn1_v = bn(ks[10], ks[11], ks[12], ks[13], H1)
    bn2_g, bn2_b, bn2_m, bn2_v = bn(ks[14], ks[15], ks[16], ks[17], H2)
    bn3_g, bn3_b, bn3_m, bn3_v = bn(ks[18], ks[19], ks[20], ks[21], H3)

    return dict(
        w1=w1, b1=b1, w2=w2, b2=b2, w3=w3, b3=b3, w4=w4, b4=b4,
        wres=wres, bres=bres,
        bn1_g=bn1_g, bn1_b=bn1_b, bn1_m=bn1_m, bn1_v=bn1_v,
        bn2_g=bn2_g, bn2_b=bn2_b, bn2_m=bn2_m, bn2_v=bn2_v,
        bn3_g=bn3_g, bn3_b=bn3_b, bn3_m=bn3_m, bn3_v=bn3_v,
    )


def reference_forward(x, params):
    """Pure-JAX f32 reference with identical (eval-mode) semantics."""
    def bn(y, g, b, m, v):
        return (y - m) / jnp.sqrt(v + BN_EPS) * g + b

    def lrelu(y):
        return jnp.where(y >= 0, y, NEG_SLOPE * y)

    residual = x @ params["wres"] + params["bres"]
    h = lrelu(bn(x @ params["w1"] + params["b1"],
                 params["bn1_g"], params["bn1_b"], params["bn1_m"], params["bn1_v"]))
    h = lrelu(bn(h @ params["w2"] + params["b2"],
                 params["bn2_g"], params["bn2_b"], params["bn2_m"], params["bn2_v"]))
    h = lrelu(bn(h @ params["w3"] + params["b3"],
                 params["bn3_g"], params["bn3_b"], params["bn3_m"], params["bn3_v"]))
    h = h @ params["w4"] + params["b4"]
    return h + residual


if __name__ == "__main__":
    key = jax.random.PRNGKey(0)
    k_params, k_x = jax.random.split(key)

    params = init_params(k_params)
    kparams = prepare_kernel_params(params)     # one-time fold / pack / bf16 cast

    # B=64: even split -> 2 grid steps (tb=32). B=37: not a multiple of 8 ->
    # trailing partial block + masked (tb,8) writeback. B=6: single full block.
    for B in (64, 37, 6):
        x = jax.random.normal(jax.random.fold_in(k_x, B), (B, INPUT_SIZE),
                              jnp.float32)
        out = enhanced_eight_class_forward(x, kparams)
        out = jax.block_until_ready(out)

        ref = reference_forward(x, params)
        assert out.shape == (B, OUT), out.shape
        # bf16 weights/activations on the MXU (f32 accumulation) vs. f32 reference.
        assert bool(jnp.allclose(out, ref, atol=5e-2, rtol=5e-2)), (
            B, float(jnp.max(jnp.abs(out - ref))))

    print("KERNEL_OK")
</pallas_src>

<mosaic_0001>
module attributes {stable_mosaic.version = 11 : i64} {
  func.func @model_kernel(%arg0: i32, %arg1: memref<32x768xf32, #tpu.memory_space<vmem>>, %arg2: memref<768x256xbf16, #tpu.memory_space<vmem>>, %arg3: memref<256x128xbf16, #tpu.memory_space<vmem>>, %arg4: memref<128x64xbf16, #tpu.memory_space<vmem>>, %arg5: memref<768x8xbf16, #tpu.memory_space<vmem>>, %arg6: memref<64x8xbf16, #tpu.memory_space<vmem>>, %arg7: memref<1x640xf32, #tpu.memory_space<vmem>>, %arg8: memref<32x8xf32, #tpu.memory_space<vmem>>) attributes {dimension_semantics = [#tpu.dimension_semantics<parallel>], iteration_bounds = array<i64: 2>, scalar_prefetch = 0 : i64, scratch_operands = 0 : i64, tpu.core_type = #tpu.core_type<tc>, window_params = [{transform_indices = @transform_0, window_bounds = array<i64: 32, 768>}, {pipeline_mode = #tpu.pipeline_mode<synchronous>, transform_indices = @transform_1, window_bounds = array<i64: 768, 256>}, {pipeline_mode = #tpu.pipeline_mode<synchronous>, transform_indices = @transform_2, window_bounds = array<i64: 256, 128>}, {pipeline_mode = #tpu.pipeline_mode<synchronous>, transform_indices = @transform_3, window_bounds = array<i64: 128, 64>}, {pipeline_mode = #tpu.pipeline_mode<synchronous>, transform_indices = @transform_4, window_bounds = array<i64: 768, 8>}, {pipeline_mode = #tpu.pipeline_mode<synchronous>, transform_indices = @transform_5, window_bounds = array<i64: 64, 8>}, {pipeline_mode = #tpu.pipeline_mode<synchronous>, transform_indices = @transform_6, window_bounds = array<i64: 1, 640>}, {transform_indices = @transform_7, window_bounds = array<i64: 32, 8>}]} {
    %c0 = arith.constant 0 : index
    %c0_0 = arith.constant 0 : index
    %0 = vector.load %arg1[%c0, %c0_0] : memref<32x768xf32, #tpu.memory_space<vmem>>, vector<32x768xf32>
    %1 = arith.truncf %0 : vector<32x768xf32> to vector<32x768xbf16>
    %c0_1 = arith.constant 0 : index
    %c0_2 = arith.constant 0 : index
    %2 = vector.load %arg5[%c0_1, %c0_2] : memref<768x8xbf16, #tpu.memory_space<vmem>>, vector<768x8xbf16>
    %cst = arith.constant dense<0.000000e+00> : vector<32x8xf32>
    %3 = tpu.matmul %1, %2, %cst {dimension_numbers = #tpu.dot_dimension_numbers<[1], [0], [0], [1], [0, 0, 1, 1], [], []>} : vector<32x768xbf16>, vector<768x8xbf16>, vector<32x8xf32> -> vector<32x8xf32>
    %c0_3 = arith.constant 0 : index
    %c0_4 = arith.constant 0 : index
    %4 = vector.load %arg2[%c0_3, %c0_4] : memref<768x256xbf16, #tpu.memory_space<vmem>>, vector<768x256xbf16>
    %cst_5 = arith.constant dense<0.000000e+00> : vector<32x256xf32>
    %5 = tpu.matmul %1, %4, %cst_5 {dimension_numbers = #tpu.dot_dimension_numbers<[1], [0], [0], [1], [0, 0, 1, 1], [], []>} : vector<32x768xbf16>, vector<768x256xbf16>, vector<32x256xf32> -> vector<32x256xf32>
    %c0_6 = arith.constant 0 : index
    %c0_7 = arith.constant 0 : index
    %6 = vector.load %arg7[%c0_6, %c0_7] : memref<1x640xf32, #tpu.memory_space<vmem>>, vector<1x256xf32>
    %7 = vector.broadcast %6 : vector<1x256xf32> to vector<32x256xf32>
    %8 = arith.addf %5, %7 : vector<32x256xf32>
    %cst_8 = arith.constant 0.00999999977 : f32
    %9 = vector.broadcast %cst_8 : f32 to vector<32x256xf32>
    %10 = arith.mulf %9, %8 : vector<32x256xf32>
    %11 = arith.maximumf %8, %10 : vector<32x256xf32>
    %12 = arith.truncf %11 : vector<32x256xf32> to vector<32x256xbf16>
    %c0_9 = arith.constant 0 : index
    %c0_10 = arith.constant 0 : index
    %13 = vector.load %arg3[%c0_9, %c0_10] : memref<256x128xbf16, #tpu.memory_space<vmem>>, vector<256x128xbf16>
    %cst_11 = arith.constant dense<0.000000e+00> : vector<32x128xf32>
    %14 = tpu.matmul %12, %13, %cst_11 {dimension_numbers = #tpu.dot_dimension_numbers<[1], [0], [0], [1], [0, 0, 1, 1], [], []>} : vector<32x256xbf16>, vector<256x128xbf16>, vector<32x128xf32> -> vector<32x128xf32>
    %c0_12 = arith.constant 0 : index
    %c256 = arith.constant 256 : index
    %15 = vector.load %arg7[%c0_12, %c256] : memref<1x640xf32, #tpu.memory_space<vmem>>, vector<1x128xf32>
    %16 = vector.broadcast %15 : vector<1x128xf32> to vector<32x128xf32>
    %17 = arith.addf %14, %16 : vector<32x128xf32>
    %cst_13 = arith.constant 0.00999999977 : f32
    %18 = vector.broadcast %cst_13 : f32 to vector<32x128xf32>
    %19 = arith.mulf %18, %17 : vector<32x128xf32>
    %20 = arith.maximumf %17, %19 : vector<32x128xf32>
    %21 = arith.truncf %20 : vector<32x128xf32> to vector<32x128xbf16>
    %c0_14 = arith.constant 0 : index
    %c0_15 = arith.constant 0 : index
    %22 = vector.load %arg4[%c0_14, %c0_15] : memref<128x64xbf16, #tpu.memory_space<vmem>>, vector<128x64xbf16>
    %cst_16 = arith.constant dense<0.000000e+00> : vector<32x64xf32>
    %23 = tpu.matmul %21, %22, %cst_16 {dimension_numbers = #tpu.dot_dimension_numbers<[1], [0], [0], [1], [0, 0, 1, 1], [], []>} : vector<32x128xbf16>, vector<128x64xbf16>, vector<32x64xf32> -> vector<32x64xf32>
    %c0_17 = arith.constant 0 : index
    %c384 = arith.constant 384 : index
    %24 = vector.load %arg7[%c0_17, %c384] : memref<1x640xf32, #tpu.memory_space<vmem>>, vector<1x64xf32>
    %25 = vector.broadcast %24 : vector<1x64xf32> to vector<32x64xf32>
    %26 = arith.addf %23, %25 : vector<32x64xf32>
    %cst_18 = arith.constant 0.00999999977 : f32
    %27 = vector.broadcast %cst_18 : f32 to vector<32x64xf32>
    %28 = arith.mulf %27, %26 : vector<32x64xf32>
    %29 = arith.maximumf %26, %28 : vector<32x64xf32>
    %30 = arith.truncf %29 : vector<32x64xf32> to vector<32x64xbf16>
    %c0_19 = arith.constant 0 : index
    %c0_20 = arith.constant 0 : index
    %31 = vector.load %arg6[%c0_19, %c0_20] : memref<64x8xbf16, #tpu.memory_space<vmem>>, vector<64x8xbf16>
    %cst_21 = arith.constant dense<0.000000e+00> : vector<32x8xf32>
    %32 = tpu.matmul %30, %31, %cst_21 {dimension_numbers = #tpu.dot_dimension_numbers<[1], [0], [0], [1], [0, 0, 1, 1], [], []>} : vector<32x64xbf16>, vector<64x8xbf16>, vector<32x8xf32> -> vector<32x8xf32>
    %33 = arith.addf %3, %32 : vector<32x8xf32>
    %c0_22 = arith.constant 0 : index
    %c512 = arith.constant 512 : index
    %34 = vector.load %arg7[%c0_22, %c512] : memref<1x640xf32, #tpu.memory_space<vmem>>, vector<1x8xf32>
    %35 = vector.broadcast %34 : vector<1x8xf32> to vector<32x8xf32>
    %36 = arith.addf %33, %35 : vector<32x8xf32>
    %c0_23 = arith.constant 0 : index
    %c0_24 = arith.constant 0 : index
    %37 = vector.load %arg8[%c0_23, %c0_24] : memref<32x8xf32, #tpu.memory_space<vmem>>, vector<32x8xf32>
    tpu.vector_store %arg8[%c0_23, %c0_24], %36 {strides = array<i32>} : memref<32x8xf32, #tpu.memory_space<vmem>>, vector<32x8xf32>,
    return
  }
  func.func @transform_0(%arg0: i32) -> (i32, i32) {
    %c0_i32 = arith.constant 0 : i32
    %c0_i32_0 = arith.constant 0 : i32
    return %arg0, %c0_i32 : i32, i32
  }
  func.func @transform_1(%arg0: i32) -> (i32, i32) {
    %c0_i32 = arith.constant 0 : i32
    %c0_i32_0 = arith.constant 0 : i32
    %c0_i32_1 = arith.constant 0 : i32
    return %c0_i32, %c0_i32_0 : i32, i32
  }
  func.func @transform_2(%arg0: i32) -> (i32, i32) {
    %c0_i32 = arith.constant 0 : i32
    %c0_i32_0 = arith.constant 0 : i32
    %c0_i32_1 = arith.constant 0 : i32
    return %c0_i32, %c0_i32_0 : i32, i32
  }
  func.func @transform_3(%arg0: i32) -> (i32, i32) {
    %c0_i32 = arith.constant 0 : i32
    %c0_i32_0 = arith.constant 0 : i32
    %c0_i32_1 = arith.constant 0 : i32
    return %c0_i32, %c0_i32_0 : i32, i32
  }
  func.func @transform_4(%arg0: i32) -> (i32, i32) {
    %c0_i32 = arith.constant 0 : i32
    %c0_i32_0 = arith.constant 0 : i32
    %c0_i32_1 = arith.constant 0 : i32
    return %c0_i32, %c0_i32_0 : i32, i32
  }
  func.func @transform_5(%arg0: i32) -> (i32, i32) {
    %c0_i32 = arith.constant 0 : i32
    %c0_i32_0 = arith.constant 0 : i32
    %c0_i32_1 = arith.constant 0 : i32
    return %c0_i32, %c0_i32_0 : i32, i32
  }
  func.func @transform_6(%arg0: i32) -> (i32, i32) {
    %c0_i32 = arith.constant 0 : i32
    %c0_i32_0 = arith.constant 0 : i32
    %c0_i32_1 = arith.constant 0 : i32
    return %c0_i32, %c0_i32_0 : i32, i32
  }
  func.func @transform_7(%arg0: i32) -> (i32, i32) {
    %c0_i32 = arith.constant 0 : i32
    %c0_i32_0 = arith.constant 0 : i32
    return %arg0, %c0_i32 : i32, i32
  }
}

</mosaic_0001>

<bundles_post_ra>
// kernel: enhanced_eight_class_forward.1
= control target key start
LH: loop header
LB: loop body
LE: loop exit
PB: predicated region body
PF: predicated region fallthrough
CT: control target
= control target key end

     0   :  { %12 = vsyncpa [#allocation3], 0  ;;  %s3249_s0 = inlined_call_operand.vmem [shape: f32[64,768], index: 0, kind: input, shape index: {}]   ;;  %s3250_s1 = inlined_call_operand.hbm [shape: bf16[768,256], index: 1, kind: input, shape index: {}]   ;;  %s3251_s2 = inlined_call_operand.vmem [shape: bf16[256,128], index: 2, kind: input, shape index: {}]   ;;  %s3252_s3 = inlined_call_operand.vmem [shape: bf16[128,64], index: 3, kind: input, shape index: {}]   ;;  %s3253_s4 = inlined_call_operand.vmem [shape: bf16[768,8], index: 4, kind: input, shape index: {}]   ;;  %s3254_s5 = inlined_call_operand.vmem [shape: bf16[64,8], index: 5, kind: input, shape index: {}]   ;;  %s3255_s6 = inlined_call_operand.hbm [shape: f32[1,640], index: 6, kind: input, shape index: {}]   ;;  %s3256_s7 = inlined_call_operand.vmem [shape: f32[64,8], index: 7, kind: output, shape index: {}]  }
   0x1   :  { %13 = vsyncpa [#allocation5], 0  ;;  %s2870_s24 = smov 0  }
   0x2 LB: > { %s2154_s25 = sadd.s32 4294967295, %s2824_s24   ;;  %p2156_p0 = scmp.ge.s32.totalorder %s2824_s24, 1  ;;  %s2824_s24 = sphi %s2870_s24, %s19_s24  }
   0x3   : > { %p202_p1 = scmp.lt.s32.totalorder %s2824_s24, 3  ;;  %s2826_s26 = smov [#allocation2]  }
   0x4   : > { %s214_s27 = sshll.u32 %s2826_s26, 4  ;;  %p2884_p3 = scmp.eq.s32.totalorder %s2154_s25, 0  ;;  %s215_s27 = int_to_ptr.vmem [resolvable:$true] %s214_s27 }
   0x5   : > { %p2878_p2 = pnand %p2156_p0, %p202_p1  ;;  %s2827_s30 = smov [#allocation4]  }
   0x6   : > { %s240_s8 = sshll.u32 %s2827_s30, 4  ;;  %s2769_s10 = scalar_lea.vmem %s215_s27, 12288  ;;  %s241_s8 = int_to_ptr.vmem [resolvable:$true] %s240_s8 }
   0x7   : > { %p2515_p4 = pneg %p2878_p2  ;;  %p2770_p7 = scmp.ne.s32.totalorder %s215_s27, %s2769_s10 }
   0x8   : > { %p2777_p10 = scmp.lt.s32.totalorder %s215_s27, %s215_s27  ;;  %p2778_p11 = scmp.lt.s32.totalorder %s2769_s10, %s2769_s10 }
   0x9   : > { %p2892_p5 = pnand %p2884_p3, %p2515_p4 }
   0xa   : > { %p2779_p12 = por %p2778_p11, %p2777_p10 }
   0xb   : > { %p2760_p6 = pneg %p2892_p5 }
   0xd   : > { %p2772_p8 = pnand %p2770_p7, %p2760_p6 }
   0xf   : > { %p2773_p9 = pneg %p2772_p8 }
  0x11   : > { %p2780_p13 = pnand %p2779_p12, %p2773_p9 }
  0x13   : > { %2783 = shalt.err (!%p2780_p13)
}
  0x14   : > { %s2828_s11 = smov 128   ;;  %s2829_s12 = smov 8  }
  0x15   : > { %2518 = dma.hbm_to_vmem [thread:$0]  (!%p2892_p5), %s3250_s1, 12288, %s215_s27, [#allocation3], %s2828_s11, %s2828_s11, %s2829_s12  }
  0x16   : > { %s2795_s15 = scalar_lea.vmem %s241_s8, 80  ;;  %s2802_s16 = scalar_lea.vmem %s241_s8, 96 }
  0x17   : > { %p2796_p0 = scmp.ne.s32.totalorder %s241_s8, %s2795_s15  ;;  %p2803_p7 = scmp.lt.s32.totalorder %s241_s8, %s241_s8 }
  0x18   : > { %p2804_p8 = scmp.lt.s32.totalorder %s2802_s16, %s2795_s15 }
  0x19   : > { %p2798_p1 = pnand %p2796_p0, %p2760_p6 }
  0x1a   : > { %p2805_p9 = por %p2804_p8, %p2803_p7 }
  0x1b   : > { %p2799_p4 = pneg %p2798_p1 }
  0x1d   : > { %p2806_p10 = pnand %p2805_p9, %p2799_p4 }
  0x1f   : > { %2809 = shalt.err (!%p2806_p10)
}
  0x20   : > { %2521 = dma.hbm_to_vmem [thread:$0]  (!%p2892_p5), %s3255_s6, 80, %s241_s8, [#allocation5]  }
  0x21   : > { %263 = sbr.rel (%p2878_p2) target bundleno = 1051 (0x41b), region = 48 }
  0x26   : > { %2815 = dma.done.wait (%p2884_p3), [#allocation3], 12288  }
  0x27   : > { %2817 = vsyncadd (%p2884_p3), [#allocation3], 4294955008 }
  0x28   : > { %2819 = dma.done.wait (%p2884_p3), [#allocation5], 80  }
  0x29   : > { %2821 = vsyncadd (%p2884_p3), [#allocation5], 4294967216  ;;  %v2538_v0 = vld [vmem:[#allocation2 + $0x74] ss:$8 sps:$4 sm:$0xff]   ;;  %v2540_v1 = vld [vmem:[#allocation2 + $0x70] ss:$8 sps:$4 sm:$0xff]  }
  0x2a   : > { %1034 = vmatprep.subr.bf16.mxu0 %v2538_v0  ;;  %v2541_v2 = vld [vmem:[#allocation2 + $0x174] ss:$8 sps:$4 sm:$0xff]   ;;  %v2543_v3 = vld [vmem:[#allocation2 + $0x170] ss:$8 sps:$4 sm:$0xff]   ;;  %v2544_v4 = vld [vmem:[#allocation2 + $0x64] ss:$8 sps:$4 sm:$0xff]  }
  0x2b   : > { %1035 = vmatpush1.bf16.msra.mxu0 %v2540_v1  ;;  %v2546_v5 = vld [vmem:[#allocation2 + $0x60] ss:$8 sps:$4 sm:$0xff]   ;;  %1087 = vmatprep.subr.bf16.mxu1 %v2541_v2  ;;  %v2547_v6 = vld [vmem:[#allocation2 + $0x164] ss:$8 sps:$4 sm:$0xff]   ;;  %v2550_v8 = vld [vmem:[#allocation2 + $0x54] ss:$8 sps:$4 sm:$0xff]  }
  0x2c   : > { %1088 = vmatpush1.bf16.msra.mxu1 %v2543_v3  ;;  %1036 = vmatprep.subr.bf16.mxu0 %v2544_v4  ;;  %v2549_v7 = vld [vmem:[#allocation2 + $0x160] ss:$8 sps:$4 sm:$0xff]   ;;  %v2552_v9 = vld [vmem:[#allocation2 + $0x50] ss:$8 sps:$4 sm:$0xff]   ;;  %v2553_v10 = vld [vmem:[#allocation2 + $0x154] ss:$8 sps:$4 sm:$0xff]  }
  0x2d   : > { %1089 = vmatprep.subr.bf16.mxu1 %v2547_v6  ;;  %v2556_v11 = vld [vmem:[#allocation2 + $0x44] ss:$8 sps:$4 sm:$0xff]   ;;  %v2555_v12 = vld [vmem:[#allocation2 + $0x150] ss:$8 sps:$4 sm:$0xff]   ;;  %v2558_v14 = vld [vmem:[#allocation2 + $0x40] ss:$8 sps:$4 sm:$0xff]  }
  0x2e   : > { %v2559_v13 = vld [vmem:[#allocation2 + $0x144] ss:$8 sps:$4 sm:$0xff]   ;;  %v2562_v15 = vld [vmem:[#allocation2 + $0x34] ss:$8 sps:$4 sm:$0xff]   ;;  %v2561_v16 = vld [vmem:[#allocation2 + $0x140] ss:$8 sps:$4 sm:$0xff]  }
  0x2f   : > { %1037 = vmatpush1.bf16.msra.mxu0 %v2546_v5  ;;  %v2565_v17 = vld [vmem:[#allocation2 + $0x134] ss:$8 sps:$4 sm:$0xff]   ;;  %v2564_v18 = vld [vmem:[#allocation2 + $0x30] ss:$8 sps:$4 sm:$0xff]   ;;  %v2568_v19 = vld [vmem:[#allocation2 + $0x24] ss:$8 sps:$4 sm:$0xff]  }
  0x30   : > { %1038 = vmatprep.subr.bf16.mxu0 %v2550_v8  ;;  %1090 = vmatpush1.bf16.msra.mxu1 %v2549_v7  ;;  %v2567_v20 = vld [vmem:[#allocation2 + $0x130] ss:$8 sps:$4 sm:$0xff]   ;;  %v2571_v21 = vld [vmem:[#allocation2 + $0x124] ss:$8 sps:$4 sm:$0xff]   ;;  %v2570_v22 = vld [vmem:[#allocation2 + $0x20] ss:$8 sps:$4 sm:$0xff]  }
  0x31   : > { %1091 = vmatprep.subr.bf16.mxu1 %v2553_v10  ;;  %v2574_v23 = vld [vmem:[#allocation2 + $0x14] ss:$8 sps:$4 sm:$0xff]   ;;  %v2573_v24 = vld [vmem:[#allocation2 + $0x120] ss:$8 sps:$4 sm:$0xff]   ;;  %v2576_v26 = vld [vmem:[#allocation2 + $0x10] ss:$8 sps:$4 sm:$0xff]  }
  0x32   : > { %v2577_v25 = vld [vmem:[#allocation2 + $0x114] ss:$8 sps:$4 sm:$0xff]   ;;  %v2580_v27 = vld [vmem:[#allocation2 + $0x4] ss:$8 sps:$4 sm:$0xff]   ;;  %s2163_s19 = sshll.u32 %s2154_s25, 2  ;;  %vm1569_vm0 = vcmask 523264  }
  0x33   : > { %1039 = vmatpush1.bf16.msra.mxu0 %v2552_v9  ;;  %v2579_v28 = vld [vmem:[#allocation2 + $0x110] ss:$8 sps:$4 sm:$0xff]   ;;  %v2583_v29 = vld [vmem:[#allocation2 + $0x104] ss:$8 sps:$4 sm:$0xff]   ;;  %v2582_v30 = vld [vmem:[#allocation2] ss:$8 sps:$4 sm:$0xff]  }
  0x34   : > { %1040 = vmatprep.subr.bf16.mxu0 %v2556_v11  ;;  %1092 = vmatpush1.bf16.msra.mxu1 %v2555_v12  ;;  %p301_p2 = scmp.lt.s32.totalorder %s2163_s19, 7  ;;  %v2586_v31 = vld [vmem:[#allocation2 + $0xf4] ss:$8 sps:$4 sm:$0xff]   ;;  %v2585_v32 = vld [vmem:[#allocation2 + $0x100] ss:$8 sps:$4 sm:$0xff]   ;;  %vm2071_vm1 = vcmask 64512  }
  0x35   : > { %1093 = vmatprep.subr.bf16.mxu1 %v2559_v13  ;;  %v2589_v33 = vld [vmem:[#allocation2 + $0x1f4] ss:$8 sps:$4 sm:$0xff]   ;;  %v2588_v34 = vld [vmem:[#allocation2 + $0xf0] ss:$8 sps:$4 sm:$0xff]   ;;  %v2592_v35 = vld [vmem:[#allocation2 + $0xe4] ss:$8 sps:$4 sm:$0xff]  }
  0x36   : > { %s3261_s19 = smov (!%p301_p2, %s2163_s19), 7  ;;  %v2591_v36 = vld [vmem:[#allocation2 + $0x1f0] ss:$8 sps:$4 sm:$0xff]   ;;  %v2595_v37 = vld [vmem:[#allocation2 + $0x1e4] ss:$8 sps:$4 sm:$0xff]  }
  0x37   : > { %1041 = vmatpush1.bf16.msra.mxu0 %v2558_v14  ;;  %v2594_v38 = vld [vmem:[#allocation2 + $0xe0] ss:$8 sps:$4 sm:$0xff]   ;;  %s2506_s20 = smul.u32 48, %s3261_s19  ;;  %v2598_v39 = vld [vmem:[#allocation2 + $0xd4] ss:$8 sps:$4 sm:$0xff]   ;;  %s2166_s30 = sshll.u32 %s3261_s19, 3 }
  0x38   : > { %1042 = vmatprep.subr.bf16.mxu0 %v2562_v15  ;;  %1094 = vmatpush1.bf16.msra.mxu1 %v2561_v16  ;;  %v2597_v40 = vld [vmem:[#allocation2 + $0x1e0] ss:$8 sps:$4 sm:$0xff]   ;;  %v2601_v41 = vld [vmem:[#allocation2 + $0x1d4] ss:$8 sps:$4 sm:$0xff]   ;;  %v2600_v42 = vld [vmem:[#allocation2 + $0xd0] ss:$8 sps:$4 sm:$0xff]   ;;  %s311_s10 = scalar_lea.vmem %s3256_s7, %s2166_s30 }
  0x39   : > { %1095 = vmatprep.subr.bf16.mxu1 %v2565_v17  ;;  %s2932_s23 = scalar_lea.vmem %s3249_s0, %s2506_s20  ;;  %v2604_v43 = vld [vmem:[#allocation2 + $0xc4] ss:$8 sps:$4 sm:$0xff]   ;;  %v2603_v44 = vld [vmem:[#allocation2 + $0x1d0] ss:$8 sps:$4 sm:$0xff]   ;;  %v2606_v48 = vld [vmem:[#allocation2 + $0xc0] ss:$8 sps:$4 sm:$0xff]  }
  0x3a   : > { %v2607_v45 = vld [vmem:[#allocation2 + $0x1c4] ss:$8 sps:$4 sm:$0xff]   ;;  %v321_v47 = vld [vmem:[%s2932_s23 + $0x38] sm:$0xff]  ;;  %v2609_v51 = vld [vmem:[#allocation2 + $0x1c0] ss:$8 sps:$4 sm:$0xff]  }
  0x3b   : > { %1043 = vmatpush1.bf16.msra.mxu0 %v2564_v18  ;;  %v315_v46 = vld [vmem:[%s2932_s23 + $0x8] sm:$0xff]  ;;  %v2610_v50 = vld [vmem:[#allocation2 + $0xb4] ss:$8 sps:$4 sm:$0xff]   ;;  %v2612_v56 = vld [vmem:[#allocation2 + $0xb0] ss:$8 sps:$4 sm:$0xff]  }
  0x3c   : > { %1044 = vmatprep.subr.bf16.mxu0 %v2568_v19  ;;  %1096 = vmatpush1.bf16.msra.mxu1 %v2567_v20  ;;  %v2936_v49 = vpack.c.bf16 %v321_v47, %v315_v46  ;;  %v317_v52 = vld [vmem:[%s2932_s23 + $0x18] sm:$0xff]  ;;  %v323_v53 = vld [vmem:[%s2932_s23 + $0x48] sm:$0xff]  ;;  %v314_v5 = vld [vmem:[%s2932_s23] sm:$0xff] }
  0x3d   : > { %1097 = vmatprep.subr.bf16.mxu1 %v2571_v21  ;;  %v2613_v54 = vld [vmem:[#allocation2 + $0x1b4] ss:$8 sps:$4 sm:$0xff]   ;;  %v2941_v55 = vpack.c.bf16 %v323_v53, %v317_v52  ;;  %v2616_v57 = vld [vmem:[#allocation2 + $0xa4] ss:$8 sps:$4 sm:$0xff]   ;;  %v2615_v58 = vld [vmem:[#allocation2 + $0x1b0] ss:$8 sps:$4 sm:$0xff]  }
  0x3e   : > { %1066 = vmatprep.mubr.bf16.mxu0 %v2936_v49  ;;  %v2619_v59 = vld [vmem:[#allocation2 + $0x1a4] ss:$8 sps:$4 sm:$0xff]   ;;  %v2618_v60 = vld [vmem:[#allocation2 + $0xa0] ss:$8 sps:$4 sm:$0xff]   ;;  %v2622_v61 = vld [vmem:[#allocation2 + $0x94] ss:$8 sps:$4 sm:$0xff]  }
  0x3f   : > { %1045 = vmatpush1.bf16.msra.mxu0 %v2570_v22  ;;  %1119 = vmatprep.mubr.bf16.mxu1 %v2941_v55  ;;  %v2621_v62 = vld [vmem:[#allocation2 + $0x1a0] ss:$8 sps:$4 sm:$0xff]   ;;  %v2625_v63 = vld [vmem:[#allocation2 + $0x194] ss:$8 sps:$4 sm:$0xff]   ;;  %v2624_v0 = vld [vmem:[#allocation2 + $0x90] ss:$8 sps:$4 sm:$0xff]  }
  0x40   : > { %1046 = vmatprep.subr.bf16.mxu0 %v2574_v23  ;;  %1098 = vmatpush1.bf16.msra.mxu1 %v2573_v24  ;;  %v2627_v1 = vld [vmem:[#allocation2 + $0x190] ss:$8 sps:$4 sm:$0xff]   ;;  %v2628_v2 = vld [vmem:[#allocation2 + $0x84] ss:$8 sps:$4 sm:$0xff]   ;;  %v2630_v3 = vld [vmem:[#allocation2 + $0x80] ss:$8 sps:$4 sm:$0xff]  }
  0x41   : > { %1099 = vmatprep.subr.bf16.mxu1 %v2577_v25  ;;  %v2631_v4 = vld [vmem:[#allocation2 + $0x184] ss:$8 sps:$4 sm:$0xff]   ;;  %v2633_v6 = vld [vmem:[#allocation2 + $0x180] ss:$8 sps:$4 sm:$0xff]   ;;  %v320_v7 = vld [vmem:[%s2932_s23 + $0x30] sm:$0xff] }
  0x42   : > { %v2636_v8 = vld [vmem:[#allocation2 + $0x274] ss:$8 sps:$4 sm:$0xff]   ;;  %v322_v10 = vld [vmem:[%s2932_s23 + $0x40] sm:$0xff]  ;;  %v2948_v11 = vpack.c.bf16 %v320_v7, %v314_v5  ;;  %v327_v12 = vld [vmem:[%s2932_s23 + $0x68] sm:$0xff] }
  0x43   : > { %1047 = vmatpush1.bf16.msra.mxu0 %v2576_v26  ;;  %v316_v9 = vld [vmem:[%s2932_s23 + $0x10] sm:$0xff]  ;;  %v333_v14 = vld [vmem:[%s2932_s23 + $0x98] sm:$0xff]  ;;  %v2639_v16 = vld [vmem:[#allocation2 + $0x264] ss:$8 sps:$4 sm:$0xff]  }
  0x44   : > { %1048 = vmatprep.subr.bf16.mxu0 %v2580_v27  ;;  %1100 = vmatpush1.bf16.msra.mxu1 %v2579_v28  ;;  %v2634_v13 = vld [vmem:[#allocation2 + $0x270] ss:$8 sps:$4 sm:$0xff]   ;;  %v2952_v15 = vpack.c.bf16 %v322_v10, %v316_v9  ;;  %v2954_v17 = vpack.c.bf16 %v333_v14, %v327_v12  ;;  %v335_v19 = vld [vmem:[%s2932_s23 + $0xa8] sm:$0xff]  ;;  %v2642_v22 = vld [vmem:[#allocation2 + $0x254] ss:$8 sps:$4 sm:$0xff]  }
  0x45   : > { %1101 = vmatprep.subr.bf16.mxu1 %v2583_v29  ;;  %v329_v18 = vld [vmem:[%s2932_s23 + $0x78] sm:$0xff]  ;;  %v2637_v21 = vld [vmem:[#allocation2 + $0x260] ss:$8 sps:$4 sm:$0xff]   ;;  %v332_v24 = vld [vmem:[%s2932_s23 + $0x90] sm:$0xff] }
  0x46   : > { %v2958_v20 = vpack.c.bf16 %v335_v19, %v329_v18  ;;  %v326_v23 = vld [vmem:[%s2932_s23 + $0x60] sm:$0xff]  ;;  %v328_v25 = vld [vmem:[%s2932_s23 + $0x70] sm:$0xff]  ;;  %v319_v27 = vld [vmem:[%s2932_s23 + $0x28] sm:$0xff] }
  0x47   : > { %1049 = vmatpush1.bf16.msra.mxu0 %v2582_v30  ;;  %v334_v26 = vld [vmem:[%s2932_s23 + $0xa0] sm:$0xff]  ;;  %v325_v28 = vld [vmem:[%s2932_s23 + $0x58] sm:$0xff]  ;;  %v2970_v29 = vpack.c.bf16 %v332_v24, %v326_v23  ;;  %v2685_v9 = vld [vmem:[%s3251_s2 + $0x30] sm:$0xff]  }
  0x48   : > { %1050 = vmatprep.subr.bf16.mxu0 %v2586_v31  ;;  %1102 = vmatpush1.bf16.msra.mxu1 %v2585_v32  ;;  %v2640_v30 = vld [vmem:[#allocation2 + $0x250] ss:$8 sps:$4 sm:$0xff]   ;;  %v2972_v31 = vpack.c.bf16 %v325_v28, %v319_v27  ;;  %v2645_v32 = vld [vmem:[#allocation2 + $0x244] ss:$8 sps:$4 sm:$0xff]   ;;  %v2661_v46 = vld [vmem:[#allocation2 + $0x2e0] ss:$8 sps:$4 sm:$0xff]  }
  0x49   : > { %1103 = vmatprep.subr.bf16.mxu1 %v2589_v33  ;;  %v2974_v33 = vpack.c.bf16 %v334_v26, %v328_v25  ;;  %v2666_v47 = vld [vmem:[#allocation2 + $0x2d4] ss:$8 sps:$4 sm:$0xff]   ;;  %v2670_v53 = vld [vmem:[#allocation2 + $0x2b0] ss:$8 sps:$4 sm:$0xff]   ;;  %v2686_v10 = vld [vmem:[%s3251_s2 + $0x68] sm:$0xff]  }
  0x4a   : > { %v2672_v52 = vld [vmem:[#allocation2 + $0x2b4] ss:$8 sps:$4 sm:$0xff]   ;;  %v2687_v12 = vld [vmem:[%s3251_s2 + $0x28] sm:$0xff]   ;;  %v2689_v14 = vld [vmem:[%s3251_s2 + $0x20] sm:$0xff]  }
  0x4b   : > { %1051 = vmatpush2.bf16.msra.mxu0 %v2588_v34  ;;  %v2643_v34 = vld [vmem:[#allocation2 + $0x240] ss:$8 sps:$4 sm:$0xff]   ;;  %v2683_v7 = vld [vmem:[%s3251_s2 + $0x38] sm:$0xff]   ;;  %v2692_v19 = vld [vmem:[%s3251_s2 + $0x50] sm:$0xff]  }
  0x4c   : > { %1052 = vmatprep.subr.bf16.mxu0 %v2592_v35  ;;  %1104 = vmatpush2.bf16.msra.mxu1 %v2591_v36  ;;  %v2648_v35 = vld [vmem:[#allocation2 + $0x234] ss:$8 sps:$4 sm:$0xff]   ;;  %v2646_v36 = vld [vmem:[#allocation2 + $0x230] ss:$8 sps:$4 sm:$0xff]   ;;  %v2695_v23 = vld [vmem:[%s3251_s2 + $0x8] sm:$0xff]  }
  0x4d   : > { %1105 = vmatprep.subr.bf16.mxu1 %v2595_v37  ;;  %v2651_v37 = vld [vmem:[#allocation2 + $0x224] ss:$8 sps:$4 sm:$0xff]   ;;  %v2691_v18 = vld [vmem:[%s3251_s2 + $0x18] sm:$0xff]  }
  0x4e   : > { %v2696_v24 = vld [vmem:[%s3251_s2 + $0x40] sm:$0xff]   ;;  %v3045_v26 = vld [vmem:[%s3252_s3 + $0x38] sm:$0xff]  }
  0x4f   : > { %1053 = vmatpush2.bf16.msra.mxu0 %v2594_v38  ;;  %v2649_v38 = vld [vmem:[#allocation2 + $0x220] ss:$8 sps:$4 sm:$0xff]  }
  0x50   : > { %1054 = vmatprep.subr.bf16.mxu0 %v2598_v39  ;;  %1106 = vmatpush2.bf16.msra.mxu1 %v2597_v40  ;;  %v2654_v39 = vld [vmem:[#allocation2 + $0x214] ss:$8 sps:$4 sm:$0xff]   ;;  %v2652_v40 = vld [vmem:[#allocation2 + $0x210] ss:$8 sps:$4 sm:$0xff]   ;;  %v2697_v25 = vld [vmem:[%s3251_s2] sm:$0xff]  }
  0x51   : > { %1107 = vmatprep.subr.bf16.mxu1 %v2601_v41  ;;  %v2657_v41 = vld [vmem:[#allocation2 + $0x204] ss:$8 sps:$4 sm:$0xff]  }
  0x53   : > { %1055 = vmatpush2.bf16.msra.mxu0 %v2600_v42  ;;  %v2655_v42 = vld [vmem:[#allocation2 + $0x200] ss:$8 sps:$4 sm:$0xff]  }
  0x54   : > { %1056 = vmatprep.subr.bf16.mxu0 %v2604_v43  ;;  %1108 = vmatpush2.bf16.msra.mxu1 %v2603_v44  ;;  %v2660_v43 = vld [vmem:[#allocation2 + $0x2f4] ss:$8 sps:$4 sm:$0xff]   ;;  %v2658_v44 = vld [vmem:[#allocation2 + $0x2f0] ss:$8 sps:$4 sm:$0xff]  }
  0x55   : > { %1109 = vmatprep.subr.bf16.mxu1 %v2607_v45  ;;  %v2663_v45 = vld [vmem:[#allocation2 + $0x2e4] ss:$8 sps:$4 sm:$0xff]  }
  0x57   : > { %1057 = vmatpush2.bf16.msra.mxu0 %v2606_v48  ;;  %v2664_v48 = vld [vmem:[#allocation2 + $0x2d0] ss:$8 sps:$4 sm:$0xff]  }
  0x58   : > { %1058 = vmatprep.subr.bf16.mxu0 %v2610_v50  ;;  %1110 = vmatpush2.bf16.msra.mxu1 %v2609_v51  ;;  %v2669_v50 = vld [vmem:[#allocation2 + $0x2c4] ss:$8 sps:$4 sm:$0xff]   ;;  %v2667_v51 = vld [vmem:[#allocation2 + $0x2c0] ss:$8 sps:$4 sm:$0xff]  }
  0x59   : > { %1111 = vmatprep.subr.bf16.mxu1 %v2613_v54  ;;  %v2675_v54 = vld [vmem:[#allocation2 + $0x2a4] ss:$8 sps:$4 sm:$0xff]  }
  0x5b   : > { %1059 = vmatpush2.bf16.msra.mxu0 %v2612_v56  ;;  %v2673_v56 = vld [vmem:[#allocation2 + $0x2a0] ss:$8 sps:$4 sm:$0xff]  }
  0x5c   : > { %1060 = vmatprep.subr.bf16.mxu0 %v2616_v57  ;;  %1112 = vmatpush2.bf16.msra.mxu1 %v2615_v58  ;;  %v2678_v57 = vld [vmem:[#allocation2 + $0x294] ss:$8 sps:$4 sm:$0xff]   ;;  %v2676_v58 = vld [vmem:[#allocation2 + $0x290] ss:$8 sps:$4 sm:$0xff]  }
  0x5d   : > { %1113 = vmatprep.subr.bf16.mxu1 %v2619_v59  ;;  %v2681_v59 = vld [vmem:[#allocation2 + $0x284] ss:$8 sps:$4 sm:$0xff]  }
  0x5f   : > { %1061 = vmatpush2.bf16.msra.mxu0 %v2618_v60  ;;  %v2679_v60 = vld [vmem:[#allocation2 + $0x280] ss:$8 sps:$4 sm:$0xff]  }
  0x60   : > { %1062 = vmatprep.subr.bf16.mxu0 %v2622_v61  ;;  %1114 = vmatpush2.bf16.msra.mxu1 %v2621_v62  ;;  %v318_v61 = vld [vmem:[%s2932_s23 + $0x20] sm:$0xff]  ;;  %v324_v62 = vld [vmem:[%s2932_s23 + $0x50] sm:$0xff] }
  0x61   : > { %1115 = vmatprep.subr.bf16.mxu1 %v2625_v63  ;;  %v331_v63 = vld [vmem:[%s2932_s23 + $0x88] sm:$0xff] }
  0x63   : > { %1063 = vmatpush2.bf16.msra.mxu0 %v2624_v0  ;;  %v337_v0 = vld [vmem:[%s2932_s23 + $0xb8] sm:$0xff] }
  0x64   : > { %1064 = vmatprep.subr.bf16.mxu0 %v2628_v2  ;;  %1116 = vmatpush2.bf16.msra.mxu1 %v2627_v1  ;;  %v2983_v1 = vpack.c.bf16 %v324_v62, %v318_v61  ;;  %v2985_v2 = vpack.c.bf16 %v337_v0, %v331_v63 }
  0x65   : > { %1117 = vmatprep.subr.bf16.mxu1 %v2631_v4  ;;  %v336_v4 = vld [vmem:[%s2932_s23 + $0xb0] sm:$0xff] }
  0x67   : > { %1065 = vmatpush2.bf16.msra.mxu0 %v2630_v3  ;;  %v330_v3 = vld [vmem:[%s2932_s23 + $0x80] sm:$0xff] }
  0x68   : > { %1140 = vmatprep.subr.bf16.mxu0 %v2636_v8  ;;  %1118 = vmatpush2.bf16.msra.mxu1 %v2633_v6  ;;  %v2991_v5 = vpack.c.bf16 %v336_v4, %v330_v3  ;;  %v2682_v6 = vld [vmem:[%s3251_s2 + $0x78] sm:$0xff]   ;;  %v2684_v8 = vld [vmem:[%s3251_s2 + $0x70] sm:$0xff]  }
  0x69   : > { %2346 = vmatprep.subr.bf16.mxu1 %v2682_v6 }
  0x6a   : > { %1067 = vmatmul.mubr.bf16.vlgmr.msra.gmra.mxu0 %v2948_v11 }
  0x6b   : > { %1141 = vmatpush1.bf16.msra.mxu0 %v2634_v13  ;;  %1076 = vmatprep.mubr.bf16.mxu0 %v2954_v17  ;;  %v2688_v13 = vld [vmem:[%s3251_s2 + $0x60] sm:$0xff]  }
  0x6c   : > { %1120 = vmatmul.mubr.bf16.vlgmr.msra.gmra.mxu1 %v2952_v15  ;;  %1142 = vmatprep.subr.bf16.mxu0 %v2639_v16  ;;  %v2690_v16 = vld [vmem:[%s3251_s2 + $0x58] sm:$0xff]  }
  0x6d   : > { %1129 = vmatprep.mubr.bf16.mxu1 %v2958_v20  ;;  %2347 = vmatpush3.bf16.msra.mxu1 %v2683_v7 }
  0x6e   : > { %2348 = vmatprep.subr.bf16.mxu1 %v2684_v8 }
  0x6f   : > { %1143 = vmatpush1.bf16.msra.mxu0 %v2637_v21  ;;  %v2693_v21 = vld [vmem:[%s3251_s2 + $0x10] sm:$0xff]  }
  0x70   : > { %1144 = vmatprep.subr.bf16.mxu0 %v2642_v22  ;;  %v2694_v22 = vld [vmem:[%s3251_s2 + $0x48] sm:$0xff]  }
  0x71   : > { %2349 = vmatpush3.bf16.msra.mxu1 %v2685_v9 }
  0x72   : > { %1077 = vmatmul.mubr.bf16.gmra.mxu0 %v2970_v29  ;;  %2350 = vmatprep.subr.bf16.mxu1 %v2686_v10 }
  0x73   : > { %1145 = vmatpush1.bf16.msra.mxu0 %v2640_v30  ;;  %1172 = vmatprep.mubr.bf16.mxu0 %v2972_v31 }
  0x74   : > { %1146 = vmatprep.subr.bf16.mxu0 %v2645_v32  ;;  %1130 = vmatmul.mubr.bf16.gmra.mxu1 %v2974_v33  ;;  %v544_v32 = vlaneseq }
  0x75   : > { %2351 = vmatpush3.bf16.msra.mxu1 %v2687_v12 }
  0x76   : > { %2352 = vmatprep.subr.bf16.mxu1 %v2688_v13 }
  0x77   : > { %1147 = vmatpush1.bf16.msra.mxu0 %v2643_v34 }
  0x78   : > { %1148 = vmatprep.subr.bf16.mxu0 %v2648_v35 }
  0x79   : > { %2353 = vmatpush3.bf16.msra.mxu1 %v2689_v14 }
  0x7a   : > { %2354 = vmatprep.subr.bf16.mxu1 %v2690_v16 }
  0x7b   : > { %1149 = vmatpush1.bf16.msra.mxu0 %v2646_v36  ;;  %v545_v36 = vshrl.u32 %v544_v32, 7 }
  0x7c   : > { %1150 = vmatprep.subr.bf16.mxu0 %v2651_v37 }
  0x7d   : > { %2355 = vmatpush3.bf16.msra.mxu1 %v2691_v18 }
  0x7e   : > { %2356 = vmatprep.subr.bf16.mxu1 %v2692_v19 }
  0x7f   : > { %1151 = vmatpush1.bf16.msra.mxu0 %v2649_v38 }
  0x80   : > { %1152 = vmatprep.subr.bf16.mxu0 %v2654_v39  ;;  %v550_v39 = vsub.s32 1, %v545_v36 }
  0x81   : > { %2357 = vmatpush3.bf16.msra.mxu1 %v2693_v21 }
  0x82   : > { %2358 = vmatprep.subr.bf16.mxu1 %v2694_v22 }
  0x83   : > { %1153 = vmatpush1.bf16.msra.mxu0 %v2652_v40  ;;  %v542_v40 = vld [vmem:[#allocation4] sm:$0x3] }
  0x84   : > { %1154 = vmatprep.subr.bf16.mxu0 %v2657_v41  ;;  %v546_v41 = vsub.s32 0, %v545_v36 }
  0x85   : > { %2359 = vmatpush3.bf16.msra.mxu1 %v2695_v23 }
  0x86   : > { %2360 = vmatprep.subr.bf16.mxu1 %v2696_v24 }
  0x87   : > { %1155 = vmatpush1.bf16.msra.mxu0 %v2655_v42 }
  0x88   : > { %1156 = vmatprep.subr.bf16.mxu0 %v2660_v43 }
  0x89   : > { %2361 = vmatpush3.bf16.msra.mxu1 %v2697_v25 }
  0x8a   : > { %2474 = vmatprep.subr.bf16.mxu1 %v3045_v26 }
  0x8b   : > { %1157 = vmatpush2.bf16.msra.mxu0 %v2658_v44  ;;  %v551_v44 = vrot.slane %v542_v40, %v550_v39 }
  0x8c   : > { %1158 = vmatprep.subr.bf16.mxu0 %v2663_v45  ;;  %v547_v45 = vrot.slane %v542_v40, %v546_v41 }
  0x8f   : > { %1159 = vmatpush2.bf16.msra.mxu0 %v2661_v46 }
  0x90   : > { %1160 = vmatprep.subr.bf16.mxu0 %v2666_v47 }
  0x93   : > { %1161 = vmatpush2.bf16.msra.mxu0 %v2664_v48 }
  0x94   : > { %1162 = vmatprep.subr.bf16.mxu0 %v2669_v50 }
  0x97   : > { %1163 = vmatpush2.bf16.msra.mxu0 %v2667_v51 }
  0x98   : > { %1164 = vmatprep.subr.bf16.mxu0 %v2672_v52 }
  0x9b   : > { %1165 = vmatpush2.bf16.msra.mxu0 %v2670_v53 }
  0x9c   : > { %1166 = vmatprep.subr.bf16.mxu0 %v2675_v54 }
  0x9f   : > { %1167 = vmatpush2.bf16.msra.mxu0 %v2673_v56 }
  0xa0   : > { %1168 = vmatprep.subr.bf16.mxu0 %v2678_v57 }
  0xa3   : > { %1169 = vmatpush2.bf16.msra.mxu0 %v2676_v58 }
  0xa4   : > { %1170 = vmatprep.subr.bf16.mxu0 %v2681_v59 }
  0xa7   : > { %1171 = vmatpush2.bf16.msra.mxu0 %v2679_v60 }
  0xaa   : > { %1173 = vmatmul.mubr.bf16.vlgmr.msra.gmra.mxu0 %v2983_v1 }
  0xab   : > { %1182 = vmatprep.mubr.bf16.mxu0 %v2985_v2 }
  0xb2   : > { %1183 = vmatmul.mubr.bf16.gmra.mxu0 %v2991_v5 }
 0x12a   : > { %v1068_v27 = vpop.f32.mrf.mxu0 }
 0x12b   : > { %v1069_v50 = vadd.f32 %v1068_v27, %v547_v45 }
 0x12c   : > { %v1070_v28 = vpop.f32.mrf.mxu0  ;;  %v1121_v34 = vpop.f32.mrf.mxu1 }
 0x12d   : > { %v1071_v48 = vadd.f32 %v1070_v28, %v551_v44  ;;  %v1122_v58 = vadd.f32 %v1121_v34, %v1069_v50 }
 0x12e   : > { %v1072_v30 = vpop.f32.mrf.mxu0  ;;  %v1123_v38 = vpop.f32.mrf.mxu1 }
 0x12f   : > { %v1073_v53 = vadd.f32 %v1072_v30, %v547_v45  ;;  %v1124_v56 = vadd.f32 %v1123_v38, %v1071_v48 }
 0x130   : > { %v1074_v35 = vpop.f32.mrf.mxu0  ;;  %v1125_v43 = vpop.f32.mrf.mxu1 }
 0x131   : > { %v1075_v57 = vadd.f32 %v1074_v35, %v551_v44  ;;  %v1126_v61 = vadd.f32 %v1125_v43, %v1073_v53  ;;  %v2699_v43 = vld [vmem:[%s3252_s3 + $0x30] sm:$0xff]  }
 0x132   : > { %v1078_v37 = vpop.f32.mrf.mxu0  ;;  %v1127_v47 = vpop.f32.mrf.mxu1 }
 0x133   : > { %v1128_v3 = vadd.f32 %v1127_v47, %v1075_v57  ;;  %v1079_v7 = vadd.f32 %v1078_v37, %v547_v45  ;;  %v2700_v57 = vld [vmem:[%s3252_s3 + $0x28] sm:$0xff]  }
 0x134   : > { %v1080_v42 = vpop.f32.mrf.mxu0  ;;  %v1131_v51 = vpop.f32.mrf.mxu1 }
 0x135   : > { %v1081_v4 = vadd.f32 %v1080_v42, %v551_v44  ;;  %v1132_v23 = vadd.f32 %v1131_v51, %v1079_v7 }
 0x136   : > { %v1082_v46 = vpop.f32.mrf.mxu0  ;;  %v1133_v59 = vpop.f32.mrf.mxu1 }
 0x137   : > { %v1083_v10 = vadd.f32 %v1082_v46, %v547_v45  ;;  %v1134_v19 = vadd.f32 %v1133_v59, %v1081_v4  ;;  %v2703_v59 = vld [vmem:[%s3252_s3 + $0x10] sm:$0xff]  }
 0x138   : > { %v1084_v52 = vpop.f32.mrf.mxu0  ;;  %v1135_v8 = vpop.f32.mrf.mxu1 }
 0x139   : > { %v1085_v21 = vadd.f32 %v1084_v52, %v551_v44  ;;  %v1136_v28 = vadd.f32 %v1135_v8, %v1083_v10 }
 0x13a   : > { %v1137_v24 = vpop.f32.mrf.mxu1 }
 0x13b   : > { %v1138_v38 = vadd.f32 %v1137_v24, %v1085_v21 }
 0x16a   : > { %v1174_v54 = vpop.f32.mrf.mxu0 }
 0x16b   : > { %v1175_v63 = vadd.f32 %v1174_v54, %v1122_v58  ;;  %v2702_v58 = vld [vmem:[%s3252_s3 + $0x18] sm:$0xff]  }
 0x16c   : > { %v1176_v60 = vpop.f32.mrf.mxu0 }
 0x16d   : > { %v1177_v62 = vadd.f32 %v1176_v60, %v1124_v56  ;;  %v1193_v16 = vmul.f32 0.01, %v1175_v63  ;;  %v2704_v60 = vld [vmem:[%s3252_s3 + $0x8] sm:$0xff]  }
 0x16e   : > { %v1178_v0 = vpop.f32.mrf.mxu0 }
 0x16f   : > { %v1179_v6 = vadd.f32 %v1178_v0, %v1126_v61  ;;  %v1194_v12 = vmul.f32 0.01, %v1177_v62  ;;  %v1201_v35 = vmax.f32 %v1175_v63, %v1193_v16  ;;  %v2705_v61 = vld [vmem:[%s3252_s3] sm:$0xff]   ;;  %v2720_v63 = vld [vmem:[%s3254_s5 + $0x18] sm:$0xff]  }
 0x170   : > { %v1180_v9 = vpop.f32.mrf.mxu0  ;;  %2494 = vmatprep.subr.bf16.mxu0 %v2720_v63 }
 0x171   : > { %v1195_v13 = vmul.f32 0.01, %v1179_v6  ;;  %v1181_v14 = vadd.f32 %v1180_v9, %v1128_v3  ;;  %v1202_v30 = vmax.f32 %v1177_v62, %v1194_v12  ;;  %v2706_v62 = vld [vmem:[%s3253_s4 + $0x78] sm:$0xff]   ;;  %2495 = vmatpush3.bf16.msra.mxu0 %v2720_v63  ;;  %v2263_v3 = vld [vmem:[#allocation4 + $0x2] ss:$0 sm:$0xff]  ;;  %v2745_v63 = vld [vmem:[%s3253_s4 + $0x150] sm:$0xff]  }
 0x172   : > { %v1184_v18 = vpop.f32.mrf.mxu0 }
 0x173   : > { %v1196_v22 = vmul.f32 0.01, %v1181_v14  ;;  %v1203_v25 = vmax.f32 %v1179_v6, %v1195_v13  ;;  %v1185_v36 = vadd.f32 %v1184_v18, %v1132_v23 }
 0x174   : > { %v1186_v27 = vpop.f32.mrf.mxu0 }
 0x175   : > { %v1204_v32 = vmax.f32 %v1181_v14, %v1196_v22  ;;  %v1187_v34 = vadd.f32 %v1186_v27, %v1134_v19  ;;  %v1209_v41 = vpack.c.bf16 %v1203_v25, %v1201_v35  ;;  %v1197_v47 = vmul.f32 0.01, %v1185_v36 }
 0x176   : > { %v1188_v37 = vpop.f32.mrf.mxu0 }
 0x177   : > { %v1189_v39 = vadd.f32 %v1188_v37, %v1136_v28  ;;  %v1210_v40 = vpack.c.bf16 %v1204_v32, %v1202_v30  ;;  %v1198_v44 = vmul.f32 0.01, %v1187_v34  ;;  %v1205_v53 = vmax.f32 %v1185_v36, %v1197_v47  ;;  %v2707_v37 = vld [vmem:[%s3253_s4 + $0x38] sm:$0xff]   ;;  %v2717_v47 = vld [vmem:[%s3253_s4 + $0x10] sm:$0xff]  }
 0x178   : > { %v1190_v42 = vpop.f32.mrf.mxu0 }
 0x179   : > { %v1199_v45 = vmul.f32 0.01, %v1189_v39  ;;  %v1191_v46 = vadd.f32 %v1190_v42, %v1138_v38  ;;  %1380 = vmatprep.mubr.bf16.mxu1 %v1210_v40  ;;  %v1206_v51 = vmax.f32 %v1187_v34, %v1198_v44  ;;  %v2709_v40 = vld [vmem:[%s3253_s4 + $0x30] sm:$0xff]   ;;  %v2711_v42 = vld [vmem:[%s3253_s4 + $0x28] sm:$0xff]   ;;  %v2714_v44 = vld [vmem:[%s3253_s4 + $0x58] sm:$0xff]  }
 0x17a   : > { %1381 = vmatmul.mubr.bf16.vlgmr.msra.gmra.mxu1 %v1209_v41  ;;  %v2710_v41 = vld [vmem:[%s3253_s4 + $0x68] sm:$0xff]  }
 0x17b   : > { %v1200_v48 = vmul.f32 0.01, %v1191_v46  ;;  %2475 = vmatpush3.bf16.msra.mxu1 %v3045_v26  ;;  %v1207_v50 = vmax.f32 %v1189_v39, %v1199_v45  ;;  %v2701_v26 = vld [vmem:[%s3252_s3 + $0x20] sm:$0xff]   ;;  %v2708_v39 = vld [vmem:[%s3253_s4 + $0x70] sm:$0xff]   ;;  %v2715_v45 = vld [vmem:[%s3253_s4 + $0x18] sm:$0xff]  }
 0x17c   : > { %2476 = vmatprep.subr.bf16.mxu1 %v2699_v43 }
 0x17d   : > { %v1208_v52 = vmax.f32 %v1191_v46, %v1200_v48  ;;  %v1211_v56 = vpack.c.bf16 %v1207_v50, %v1205_v53  ;;  %v2716_v46 = vld [vmem:[%s3253_s4 + $0x50] sm:$0xff]   ;;  %v2718_v48 = vld [vmem:[%s3253_s4 + $0x48] sm:$0xff]  }
 0x17e   : > { %v2719_v50 = vld [vmem:[%s3253_s4 + $0x8] sm:$0xff]   ;;  %v2723_v53 = vld [vmem:[%s3254_s5 + $0x10] sm:$0xff]  }
 0x17f   : > { %v1212_v54 = vpack.c.bf16 %v1208_v52, %v1206_v51  ;;  %2477 = vmatpush3.bf16.msra.mxu1 %v2699_v43  ;;  %v2712_v43 = vld [vmem:[%s3253_s4 + $0x60] sm:$0xff]   ;;  %2496 = vmatprep.subr.bf16.mxu0 %v2723_v53 }
 0x180   : > { %2478 = vmatprep.subr.bf16.mxu1 %v2700_v57  ;;  %v2721_v51 = vld [vmem:[%s3253_s4 + $0x40] sm:$0xff]   ;;  %2497 = vmatpush3.bf16.msra.mxu0 %v2723_v53 }
 0x181   : > { %1388 = vmatprep.mubr.bf16.mxu1 %v1212_v54  ;;  %v2722_v52 = vld [vmem:[%s3253_s4] sm:$0xff]   ;;  %v2724_v54 = vld [vmem:[%s3254_s5 + $0x8] sm:$0xff]  }
 0x182   : > { %1389 = vmatmul.mubr.bf16.gmra.mxu1 %v1211_v56  ;;  %2498 = vmatprep.subr.bf16.mxu0 %v2724_v54  ;;  %v2725_v56 = vld [vmem:[%s3254_s5] sm:$0xff]  }
 0x183   : > { %2479 = vmatpush3.bf16.msra.mxu1 %v2700_v57  ;;  %v2726_v57 = vld [vmem:[%s3253_s4 + $0x178] sm:$0xff]  }
 0x184   : > { %2480 = vmatprep.subr.bf16.mxu1 %v2701_v26  ;;  %2499 = vmatpush3.bf16.msra.mxu0 %v2724_v54 }
 0x185   : > { %2500 = vmatprep.subr.bf16.mxu0 %v2725_v56 }
 0x187   : > { %2481 = vmatpush3.bf16.msra.mxu1 %v2701_v26  ;;  %v2729_v26 = vld [vmem:[%s3253_s4 + $0x170] sm:$0xff]  }
 0x188   : > { %2482 = vmatprep.subr.bf16.mxu1 %v2702_v58  ;;  %2501 = vmatpush3.bf16.msra.mxu0 %v2725_v56 }
 0x18b   : > { %2483 = vmatpush3.bf16.msra.mxu1 %v2702_v58  ;;  %v2731_v58 = vld [vmem:[%s3253_s4 + $0x130] sm:$0xff]  }
 0x18c   : > { %2484 = vmatprep.subr.bf16.mxu1 %v2703_v59 }
 0x18f   : > { %2485 = vmatpush3.bf16.msra.mxu1 %v2703_v59  ;;  %v2735_v59 = vld [vmem:[%s3253_s4 + $0x128] sm:$0xff]  }
 0x190   : > { %2486 = vmatprep.subr.bf16.mxu1 %v2704_v60 }
 0x193   : > { %2487 = vmatpush3.bf16.msra.mxu1 %v2704_v60  ;;  %v2739_v60 = vld [vmem:[%s3253_s4 + $0x120] sm:$0xff]  }
 0x194   : > { %2488 = vmatprep.subr.bf16.mxu1 %v2705_v61 }
 0x197   : > { %2489 = vmatpush3.bf16.msra.mxu1 %v2705_v61  ;;  %v2741_v61 = vld [vmem:[%s3253_s4 + $0x158] sm:$0xff]  }
 0x198   : > { %2390 = vmatprep.subr.bf16.mxu1 %v2706_v62  ;;  %v2743_v62 = vld [vmem:[%s3253_s4 + $0x118] sm:$0xff]  }
 0x23a   : > { %v2362_v0 = vpop.f32.mrf.mxu1 }
 0x23c   : > { %v2363_v4 = vpop.f32.mrf.mxu1 }
 0x23d   : > { %v2364_v6 = vadd.f32 %v2363_v4, %v2362_v0  ;;  %v2747_v0 = vld [vmem:[%s3253_s4 + $0x110] sm:$0xff]   ;;  %v2751_v4 = vld [vmem:[%s3253_s4 + $0x108] sm:$0xff]  }
 0x23e   : > { %v2365_v7 = vpop.f32.mrf.mxu1 }
 0x23f   : > { %v1383_v8 = vadd.f32 %v2364_v6, %v2263_v3  ;;  %v2753_v6 = vld [vmem:[%s3253_s4 + $0x140] sm:$0xff]  }
 0x240   : > { %v2366_v9 = vpop.f32.mrf.mxu1 }
 0x241   : > { %v2367_v10 = vadd.f32 %v2366_v9, %v2365_v7  ;;  %v1397_v13 = vmul.f32 0.01, %v1383_v8  ;;  %v2755_v7 = vld [vmem:[%s3253_s4 + $0x100] sm:$0xff]  }
 0x242   : > { %v2368_v12 = vpop.f32.mrf.mxu1  ;;  %v2280_v9 = vld [vmem:[#allocation4 + $0x3] ss:$0 sm:$0xff] }
 0x243   : > { %v1386_v14 = vadd.f32 %v2367_v10, %v2263_v3  ;;  %v1401_v22 = vmax.f32 %v1383_v8, %v1397_v13 }
 0x244   : > { %v2369_v16 = vpop.f32.mrf.mxu1 }
 0x245   : > { %v1398_v18 = vmul.f32 0.01, %v1386_v14  ;;  %v2370_v19 = vadd.f32 %v2369_v16, %v2368_v12 }
 0x246   : > { %v2371_v21 = vpop.f32.mrf.mxu1 }
 0x247   : > { %v1402_v23 = vmax.f32 %v1386_v14, %v1398_v18  ;;  %v1391_v24 = vadd.f32 %v2370_v19, %v2263_v3 }
 0x248   : > { %v2372_v25 = vpop.f32.mrf.mxu1 }
 0x249   : > { %v2373_v27 = vadd.f32 %v2372_v25, %v2371_v21  ;;  %v1405_v28 = vpack.c.bf16 %v1402_v23, %v1401_v22  ;;  %v1399_v30 = vmul.f32 0.01, %v1391_v24 }
 0x24b   : > { %v1394_v32 = vadd.f32 %v2373_v27, %v2263_v3  ;;  %2490 = vmatprep.mubr.bf16.mxu1 %v1405_v28  ;;  %v1403_v35 = vmax.f32 %v1391_v24, %v1399_v30  ;;  %v2749_v3 = vld [vmem:[%s3253_s4 + $0x148] sm:$0xff]  }
 0x24d   : > { %v1400_v34 = vmul.f32 0.01, %v1394_v32 }
 0x24f   : > { %v1404_v36 = vmax.f32 %v1394_v32, %v1400_v34  ;;  %v2732_v32 = vld [vmem:[%s3253_s4 + $0xf0] sm:$0xff]  }
 0x250   : > { %v2734_v34 = vld [vmem:[%s3253_s4 + $0xb0] sm:$0xff]  }
 0x251   : > { %v1406_v38 = vpack.c.bf16 %v1404_v36, %v1403_v35  ;;  %v2736_v35 = vld [vmem:[%s3253_s4 + $0xe8] sm:$0xff]  }
 0x252   : > { %v2738_v36 = vld [vmem:[%s3253_s4 + $0xa8] sm:$0xff]  }
 0x253   : > { %2491 = vmatmul.mubr.bf16.vlgmr.msra.gmra.mxu1 %v1406_v38  ;;  %v2744_v38 = vld [vmem:[%s3253_s4 + $0xd8] sm:$0xff]  }
 0x254   : > { %2391 = vmatpush3.bf16.msra.mxu1 %v2707_v37  ;;  %1945 = vmatprep.mubr.bf16.mxu1 %v2936_v49  ;;  %v2713_v49 = vld [vmem:[%s3253_s4 + $0x20] sm:$0xff]  }
 0x255   : > { %2392 = vmatprep.subr.bf16.mxu1 %v2708_v39  ;;  %v2740_v37 = vld [vmem:[%s3253_s4 + $0xe0] sm:$0xff]   ;;  %v2746_v39 = vld [vmem:[%s3253_s4 + $0x98] sm:$0xff]  }
 0x258   : > { %2393 = vmatpush3.bf16.msra.mxu1 %v2709_v40  ;;  %v2748_v40 = vld [vmem:[%s3253_s4 + $0xd0] sm:$0xff]  }
 0x259   : > { %2394 = vmatprep.subr.bf16.mxu1 %v2710_v41  ;;  %v2750_v41 = vld [vmem:[%s3253_s4 + $0x90] sm:$0xff]  }
 0x25c   : > { %2395 = vmatpush3.bf16.msra.mxu1 %v2711_v42  ;;  %v2752_v42 = vld [vmem:[%s3253_s4 + $0xc8] sm:$0xff]  }
 0x25d   : > { %2396 = vmatprep.subr.bf16.mxu1 %v2712_v43  ;;  %v2754_v43 = vld [vmem:[%s3253_s4 + $0x88] sm:$0xff]  }
 0x260   : > { %2397 = vmatpush3.bf16.msra.mxu1 %v2713_v49  ;;  %v2756_v49 = vld [vmem:[%s3253_s4 + $0xc0] sm:$0xff]  }
 0x261   : > { %2398 = vmatprep.subr.bf16.mxu1 %v2714_v44  ;;  %v2757_v44 = vld [vmem:[%s3253_s4 + $0x80] sm:$0xff]  }
 0x264   : > { %2399 = vmatpush3.bf16.msra.mxu1 %v2715_v45 }
 0x265   : > { %2400 = vmatprep.subr.bf16.mxu1 %v2716_v46 }
 0x268   : > { %2401 = vmatpush3.bf16.msra.mxu1 %v2717_v47 }
 0x269   : > { %2402 = vmatprep.subr.bf16.mxu1 %v2718_v48 }
 0x26c   : > { %2403 = vmatpush3.bf16.msra.mxu1 %v2719_v50 }
 0x26d   : > { %2404 = vmatprep.subr.bf16.mxu1 %v2721_v51 }
 0x270   : > { %2405 = vmatpush3.bf16.msra.mxu1 %v2722_v52 }
 0x271   : > { %2446 = vmatprep.subr.bf16.mxu1 %v2726_v57 }
 0x273   : > { %1946 = vmatmul.mubr.bf16.vlgmr.msra.gmra.mxu1 %v2948_v11  ;;  %v2727_v11 = vld [vmem:[%s3253_s4 + $0x138] sm:$0xff]  }
 0x274   : > { %1953 = vmatprep.mubr.bf16.mxu1 %v2954_v17  ;;  %2447 = vmatpush3.bf16.msra.mxu1 %v2727_v11  ;;  %v2728_v17 = vld [vmem:[%s3253_s4 + $0xf8] sm:$0xff]  }
 0x275   : > { %2418 = vmatprep.subr.bf16.mxu0 %v2728_v17  ;;  %2448 = vmatprep.subr.bf16.mxu1 %v2729_v26 }
 0x278   : > { %2449 = vmatpush3.bf16.msra.mxu1 %v2731_v58 }
 0x27b   : > { %1954 = vmatmul.mubr.bf16.gmra.mxu1 %v2970_v29  ;;  %v2733_v29 = vld [vmem:[%s3253_s4 + $0x168] sm:$0xff]  }
 0x27c   : > { %2043 = vmatprep.mubr.bf16.mxu1 %v2972_v31  ;;  %2450 = vmatprep.subr.bf16.mxu1 %v2733_v29  ;;  %v2737_v31 = vld [vmem:[%s3253_s4 + $0x160] sm:$0xff]  }
 0x27d   : > { %2451 = vmatpush3.bf16.msra.mxu1 %v2735_v59 }
 0x27e   : > { %2452 = vmatprep.subr.bf16.mxu1 %v2737_v31 }
 0x281   : > { %2453 = vmatpush3.bf16.msra.mxu1 %v2739_v60 }
 0x282   : > { %2454 = vmatprep.subr.bf16.mxu1 %v2741_v61 }
 0x285   : > { %2455 = vmatpush3.bf16.msra.mxu1 %v2743_v62 }
 0x286   : > { %2456 = vmatprep.subr.bf16.mxu1 %v2745_v63 }
 0x289   : > { %2457 = vmatpush3.bf16.msra.mxu1 %v2747_v0 }
 0x28a   : > { %2458 = vmatprep.subr.bf16.mxu1 %v2749_v3  ;;  %v2343_v3 = vld [vmem:[#allocation4 + $0x4] ss:$0 sm:$0xff] }
 0x28d   : > { %2459 = vmatpush3.bf16.msra.mxu1 %v2751_v4 }
 0x28e   : > { %2460 = vmatprep.subr.bf16.mxu1 %v2753_v6 }
 0x291   : > { %2461 = vmatpush3.bf16.msra.mxu1 %v2755_v7 }
 0x294   : > { %2044 = vmatmul.mubr.bf16.vlgmr.msra.gmra.mxu1 %v2983_v1 }
 0x295   : > { %2051 = vmatprep.mubr.bf16.mxu1 %v2985_v2 }
 0x29c   : > { %2052 = vmatmul.mubr.bf16.gmra.mxu1 %v2991_v5  ;;  %v2730_v5 = vld [vmem:[%s3253_s4 + $0xb8] sm:$0xff]  }
 0x313   : > { %v2492_v8 = vpop.f32.mrf.mxu1 }
 0x314   : > { %v1521_v13 = vadd.f32 %v2492_v8, %v2280_v9 }
 0x315   : > { %v1512_v10 = vpop.f32.mrf.mxu1 }
 0x316   : > { %v1513_v12 = vadd.f32 %v2280_v9, %v1512_v10  ;;  %v1529_v23 = vmul.f32 0.01, %v1521_v13 }
 0x317   : > { %v2493_v14 = vpop.f32.mrf.mxu1 }
 0x318   : > { %v1524_v16 = vadd.f32 %v2493_v14, %v2280_v9  ;;  %v1527_v19 = vmul.f32 0.01, %v1513_v12  ;;  %v1533_v28 = vmax.f32 %v1521_v13, %v1529_v23 }
 0x319   : > { %v1515_v18 = vpop.f32.mrf.mxu1 }
 0x31a   : > { %v1530_v21 = vmul.f32 0.01, %v1524_v16  ;;  %v1516_v22 = vadd.f32 %v2280_v9, %v1515_v18  ;;  %v1531_v27 = vmax.f32 %v1513_v12, %v1527_v19 }
 0x31c   : > { %v1528_v24 = vmul.f32 0.01, %v1516_v22  ;;  %v1534_v25 = vmax.f32 %v1524_v16, %v1530_v21 }
 0x31e   : > { %v1532_v1 = vmax.f32 %v1516_v22, %v1528_v24  ;;  %v1536_v30 = vpack.c.bf16 %v1534_v25, %v1533_v28 }
 0x320   : > { %v1535_v2 = vpack.c.bf16 %v1532_v1, %v1531_v27 }
 0x322   : > { %2502 = vmatprep.mubr.msk.bf16.mxu0 %vm1569_vm0, %v1535_v2 }
 0x323   : > { %2503 = vmatmul.mubr.msk.bf16.vlgmr.msra.gmra.mxu0 %vm1569_vm0, %v1536_v30 }
 0x324   : > { %2419 = vmatpush3.bf16.msra.mxu0 %v2730_v5  ;;  %1994 = vmatprep.mubr.bf16.mxu0 %v2941_v55  ;;  %v2742_v55 = vld [vmem:[%s3253_s4 + $0xa0] sm:$0xff]  }
 0x325   : > { %2420 = vmatprep.subr.bf16.mxu0 %v2732_v32 }
 0x328   : > { %2421 = vmatpush3.bf16.msra.mxu0 %v2734_v34 }
 0x329   : > { %2422 = vmatprep.subr.bf16.mxu0 %v2736_v35 }
 0x32c   : > { %2423 = vmatpush3.bf16.msra.mxu0 %v2738_v36 }
 0x32d   : > { %2424 = vmatprep.subr.bf16.mxu0 %v2740_v37 }
 0x330   : > { %2425 = vmatpush3.bf16.msra.mxu0 %v2742_v55 }
 0x331   : > { %2426 = vmatprep.subr.bf16.mxu0 %v2744_v38 }
 0x333   : > { %v2406_v45 = vpop.f32.mrf.mxu1 }
 0x334   : > { %2427 = vmatpush3.bf16.msra.mxu0 %v2746_v39 }
 0x335   : > { %2428 = vmatprep.subr.bf16.mxu0 %v2748_v40  ;;  %v2407_v46 = vpop.f32.mrf.mxu1 }
 0x337   : > { %v2409_v47 = vpop.f32.mrf.mxu1 }
 0x338   : > { %2429 = vmatpush3.bf16.msra.mxu0 %v2750_v41 }
 0x339   : > { %2430 = vmatprep.subr.bf16.mxu0 %v2752_v42  ;;  %v2410_v48 = vpop.f32.mrf.mxu1 }
 0x33a   : > { %v2411_v62 = vadd.f32 %v2410_v48, %v2409_v47 }
 0x33b   : > { %v2412_v50 = vpop.f32.mrf.mxu1 }
 0x33c   : > { %2431 = vmatpush3.bf16.msra.mxu0 %v2754_v43 }
 0x33d   : > { %2432 = vmatprep.subr.bf16.mxu0 %v2756_v49  ;;  %v2413_v51 = vpop.f32.mrf.mxu1 }
 0x33e   : > { %v2414_v7 = vadd.f32 %v2413_v51, %v2412_v50 }
 0x33f   : > { %v2415_v52 = vpop.f32.mrf.mxu1 }
 0x340   : > { %2433 = vmatpush3.bf16.msra.mxu0 %v2757_v44 }
 0x341   : > { %v2416_v53 = vpop.f32.mrf.mxu1 }
 0x342   : > { %v2417_v22 = vadd.f32 %v2416_v53, %v2415_v52 }
 0x343   : > { %1995 = vmatmul.mubr.bf16.vlgmr.msra.gmra.mxu0 %v2952_v15 }
 0x344   : > { %2002 = vmatprep.mubr.bf16.mxu0 %v2958_v20  ;;  %v2408_v20 = vadd.f32 %v2407_v46, %v2406_v45 }
 0x34b   : > { %2003 = vmatmul.mubr.bf16.gmra.mxu0 %v2974_v33 }
 0x354   : > { %v2462_v56 = vpop.f32.mrf.mxu1 }
 0x356   : > { %v2463_v11 = vpop.f32.mrf.mxu1 }
 0x357   : > { %v2464_v63 = vadd.f32 %v2463_v11, %v2462_v56 }
 0x358   : > { %v2465_v26 = vpop.f32.mrf.mxu1 }
 0x35a   : > { %v2466_v58 = vpop.f32.mrf.mxu1 }
 0x35b   : > { %v2467_v14 = vadd.f32 %v2466_v58, %v2465_v26 }
 0x35c   : > { %v2468_v59 = vpop.f32.mrf.mxu1 }
 0x35e   : > { %v2469_v6 = vpop.f32.mrf.mxu1 }
 0x35f   : > { %v2470_v1 = vadd.f32 %v2469_v6, %v2468_v59 }
 0x360   : > { %v2471_v18 = vpop.f32.mrf.mxu1 }
 0x362   : > { %v2472_v2 = vpop.f32.mrf.mxu1 }
 0x363   : > { %v2473_v36 = vadd.f32 %v2472_v2, %v2471_v18 }
 0x3e3   : > { %v2504_v54 = vpop.f32.mrf.mxu0 }
 0x3e4   : > { %v1956_v21 = vadd.f32 %v2504_v54, %v2414_v7 }
 0x3e5   : > { %v1610_v57 = vpop.f32.mrf.mxu0 }
 0x3e6   : > { %v1948_v31 = vadd.f32 %v2408_v20, %v1610_v57 }
 0x3e7   : > { %v2505_v17 = vpop.f32.mrf.mxu0 }
 0x3e8   : > { %v1959_v30 = vadd.f32 %v2505_v17, %v2417_v22 }
 0x3e9   : > { %v1613_v15 = vpop.f32.mrf.mxu0 }
 0x3ea   : > { %v1951_v8 = vadd.f32 %v2411_v62, %v1613_v15 }
 0x403   : > { %v2434_v29 = vpop.f32.mrf.mxu0 }
 0x405   : > { %v2435_v33 = vpop.f32.mrf.mxu0 }
 0x406   : > { %v2436_v60 = vadd.f32 %v2435_v33, %v2434_v29 }
 0x407   : > { %v2437_v61 = vpop.f32.mrf.mxu0 }
 0x408   : > { %v1997_v0 = vadd.f32 %v2436_v60, %v1948_v31 }
 0x409   : > { %v2438_v4 = vpop.f32.mrf.mxu0 }
 0x40a   : > { %v2046_v9 = vadd.f32 %v2464_v63, %v1997_v0  ;;  %v2439_v10 = vadd.f32 %v2438_v4, %v2437_v61 }
 0x40b   : > { %v2440_v12 = vpop.f32.mrf.mxu0 }
 0x40c   : > { %v2067_v13 = vadd.f32 %v2343_v3, %v2046_v9  ;;  %v2000_v16 = vadd.f32 %v2439_v10, %v1951_v8 }
 0x40d   : > { %v2441_v19 = vpop.f32.mrf.mxu0 }
 0x40e   : > { %2072 = vst.msk [vmem:[%s311_s10] sm:$0xff] %vm2071_vm1, %v2067_v13  ;;  %v2049_v23 = vadd.f32 %v2467_v14, %v2000_v16  ;;  %v2442_v24 = vadd.f32 %v2441_v19, %v2440_v12 }
 0x40f   : > { %v2443_v25 = vpop.f32.mrf.mxu0 }
 0x410   : > { %v2068_v27 = vadd.f32 %v2343_v3, %v2049_v23  ;;  %v2005_v28 = vadd.f32 %v2442_v24, %v1956_v21 }
 0x411   : > { %v2444_v5 = vpop.f32.mrf.mxu0 }
 0x412   : > { %2073 = vst.msk [vmem:[%s311_s10 + $0x8] sm:$0xff] %vm2071_vm1, %v2068_v27  ;;  %v2054_v32 = vadd.f32 %v2470_v1, %v2005_v28  ;;  %v2445_v34 = vadd.f32 %v2444_v5, %v2443_v25 }
 0x414   : > { %v2069_v35 = vadd.f32 %v2343_v3, %v2054_v32  ;;  %v2008_v37 = vadd.f32 %v2445_v34, %v1959_v30 }
 0x416   : > { %2074 = vst.msk [vmem:[%s311_s10 + $0x10] sm:$0xff] %vm2071_vm1, %v2069_v35  ;;  %v2057_v55 = vadd.f32 %v2473_v36, %v2008_v37 }
 0x418   : > { %v2070_v38 = vadd.f32 %v2343_v3, %v2057_v55 }
 0x41a   : > { %2075 = vst.msk [vmem:[%s311_s10 + $0x18] sm:$0xff] %vm2071_vm1, %v2070_v38 }
 0x41b PF: > { %s19_s24 = sadd.s32 1, %s2824_s24  }
 0x41c   : > { %p16_p3 = scmp.ge.s32.totalorder %s19_s24, 4  }
 0x41e   :  { %18 = sbr.rel (!%p16_p3) target bundleno = 2 (0x2), region = 87 }
 0x423   :  { %2098 = vsyncpa [#allocation3], 1 }
 0x424   :  { %2100 = vsyncpa [#allocation3 + $0x1], 1 }
 0x425   :  { %2101 = vsyncpa [#allocation5], 1 }

</bundles_post_ra>
